<compile_context>
chip_gen: v6e
topology: v6e:2x2x1
jax: 0.10.0
libtpu: 0.0.40
codegen_flags: <defaults>
</compile_context>

<pallas_src>
import jax
import jax.numpy as jnp
from jax.experimental import pallas as pl
from jax.experimental.pallas import tpu as pltpu

IN_FEATURES = 28 * 28      # 784
OUT_FEATURES = 10
C_PAD = 16                 # small class-axis pad for the HBM output
TB_MAX = 1024              # batch tile (f32 x-tile: 2 x 3.1 MiB, safe everywhere)
NEG_BIG = -1.0e30          # bias for padded classes -> exp() == 0 exactly


def _round_up(n, m):
    return pl.cdiv(n, m) * m


def netlin_kernel(x_ref, wt_ref, b_ref, o_ref):
    # x_ref: (TB, 784) f32   wt_ref: (784, 16) f32
    # b_ref: (1, 16)   f32   o_ref:  (TB, 16)  f32
    logits = jnp.dot(
        x_ref[...], wt_ref[...], preferred_element_type=jnp.float32
    ) + b_ref[...]
    # numerically-stable log_softmax over the (padded) class axis; padded
    # columns carry logits ~ -1e30 so exp() underflows to exactly 0 and they
    # do not perturb max / sum.
    m = jnp.max(logits, axis=-1, keepdims=True)
    shifted = logits - m
    lse = jnp.log(jnp.sum(jnp.exp(shifted), axis=-1, keepdims=True))
    o_ref[...] = (shifted - lse).astype(o_ref.dtype)


def prepare_netlin_params(weight, bias):
    """One-time parameter prep (hoisted out of the per-call path).

    weight: (10, 784) f32 (PyTorch nn.Linear layout); bias: (10,) f32.
    Returns (wt_pad (784, 16) f32, b_pad (1, 16) f32).
    """
    out_features, in_features = weight.shape
    wt_pad = jnp.zeros((in_features, C_PAD), dtype=jnp.float32)
    wt_pad = wt_pad.at[:, :out_features].set(weight.T.astype(jnp.float32))
    b_pad = jnp.full((1, C_PAD), NEG_BIG, dtype=jnp.float32)
    b_pad = b_pad.at[0, :out_features].set(bias.astype(jnp.float32))
    return wt_pad, b_pad


def netlin_forward(x_nchw, wt_pad, b_pad, *, tb_max=TB_MAX):
    """x_nchw: (B, ...) f32 with prod(dims[1:]) == 784; params from prepare_netlin_params."""
    in_features = wt_pad.shape[0]
    # flatten exactly like torch .view(-1, num_flat_features); layout-preserving
    # reshape, no extra HBM pass, no dtype cast.
    x_flat = x_nchw.reshape(-1, in_features)
    B = x_flat.shape[0]

    # batch tile: multiple of 8 (sublane), capped.  No batch padding: the grid
    # is ceil-divided and Pallas masks the ragged final block's output writes.
    tb = min(tb_max, _round_up(B, 8))
    grid = (pl.cdiv(B, tb),)

    cost = pl.CostEstimate(
        flops=2 * B * in_features * C_PAD,
        transcendentals=B * (C_PAD + 1),
        bytes_accessed=(x_flat.size * 4 + wt_pad.size * 4
                        + b_pad.size * 4 + B * C_PAD * 4),
    )

    out = pl.pallas_call(
        netlin_kernel,
        out_shape=jax.ShapeDtypeStruct((B, C_PAD), jnp.float32),
        grid_spec=pl.GridSpec(
            grid=grid,
            in_specs=[
                pl.BlockSpec((tb, in_features), lambda i: (i, 0)),
                pl.BlockSpec((in_features, C_PAD), lambda i: (0, 0)),
                pl.BlockSpec((1, C_PAD), lambda i: (0, 0)),
            ],
            out_specs=pl.BlockSpec((tb, C_PAD), lambda i: (i, 0)),
        ),
        compiler_params=pltpu.CompilerParams(
            # single batch axis; "parallel" lets v7x shard it across its 2 TCs
            dimension_semantics=("parallel",),
        ),
        cost_estimate=cost,
    )(x_flat, wt_pad, b_pad)

    # drop the (tiny) padded class lanes; batch is exact (no padding was added)
    return out[:, :OUT_FEATURES]


def netlin_reference(x_nchw, weight, bias):
    B = x_nchw.shape[0]
    x = x_nchw.reshape(B, -1)
    logits = x @ weight.T + bias
    return jax.nn.log_softmax(logits, axis=-1)


if __name__ == "__main__":
    key = jax.random.PRNGKey(0)
    kx, kw, kb = jax.random.split(key, 3)

    B, C, H, W = 8, 1, 28, 28          # MNIST-style NCHW input (small batch)
    in_features, out_features = C * H * W, 10

    x = jax.random.normal(kx, (B, C, H, W), dtype=jnp.float32)
    # deterministic synthetic parameters (shapes match nn.Linear(784, 10))
    bound = 1.0 / (in_features ** 0.5)
    weight = jax.random.uniform(
        kw, (out_features, in_features), minval=-bound, maxval=bound,
        dtype=jnp.float32)
    bias = jax.random.uniform(
        kb, (out_features,), minval=-bound, maxval=bound, dtype=jnp.float32)

    # parameter prep runs once (hoisted), forward is jitted so the reshape and
    # final slice fuse with the pallas_call.
    wt_pad, b_pad = prepare_netlin_params(weight, bias)
    fwd = jax.jit(netlin_forward)

    out = fwd(x, wt_pad, b_pad)
    out = jax.block_until_ready(out)
    assert out.shape == (B, out_features)
    assert bool(jnp.all(jnp.isfinite(out)))

    # check against the f32 PyTorch-equivalent reference (kernel is full f32;
    # tolerance leaves margin for TPU default matmul precision on both sides)
    ref_f32 = netlin_reference(x, weight, bias)
    assert jnp.allclose(out, ref_f32, atol=2e-2, rtol=2e-2), (
        float(jnp.max(jnp.abs(out - ref_f32))))

    print("KERNEL_OK")
</pallas_src>

<mosaic_0001>
module attributes {stable_mosaic.version = 11 : i64} {
  func.func @netlin_kernel(%arg0: i32, %arg1: memref<8x784xf32, #tpu.memory_space<vmem>>, %arg2: memref<784x16xf32, #tpu.memory_space<vmem>>, %arg3: memref<1x16xf32, #tpu.memory_space<vmem>>, %arg4: memref<8x16xf32, #tpu.memory_space<vmem>>) attributes {dimension_semantics = [#tpu.dimension_semantics<parallel>], iteration_bounds = array<i64: 1>, scalar_prefetch = 0 : i64, scratch_operands = 0 : i64, tpu.core_type = #tpu.core_type<tc>, window_params = [{transform_indices = @transform_0, window_bounds = array<i64: 8, 784>}, {pipeline_mode = #tpu.pipeline_mode<synchronous>, transform_indices = @transform_1, window_bounds = array<i64: 784, 16>}, {pipeline_mode = #tpu.pipeline_mode<synchronous>, transform_indices = @transform_2, window_bounds = array<i64: 1, 16>}, {transform_indices = @transform_3, window_bounds = array<i64: 8, 16>}]} {
    %c0 = arith.constant 0 : index
    %c0_0 = arith.constant 0 : index
    %0 = vector.load %arg1[%c0, %c0_0] : memref<8x784xf32, #tpu.memory_space<vmem>>, vector<8x784xf32>
    %c0_1 = arith.constant 0 : index
    %c0_2 = arith.constant 0 : index
    %1 = vector.load %arg2[%c0_1, %c0_2] : memref<784x16xf32, #tpu.memory_space<vmem>>, vector<784x16xf32>
    %cst = arith.constant dense<0.000000e+00> : vector<8x16xf32>
    %2 = tpu.matmul %0, %1, %cst {dimension_numbers = #tpu.dot_dimension_numbers<[1], [0], [0], [1], [0, 0, 1, 1], [], []>} : vector<8x784xf32>, vector<784x16xf32>, vector<8x16xf32> -> vector<8x16xf32>
    %c0_3 = arith.constant 0 : index
    %c0_4 = arith.constant 0 : index
    %3 = vector.load %arg3[%c0_3, %c0_4] : memref<1x16xf32, #tpu.memory_space<vmem>>, vector<1x16xf32>
    %4 = vector.broadcast %3 : vector<1x16xf32> to vector<8x16xf32>
    %5 = arith.addf %2, %4 : vector<8x16xf32>
    %cst_5 = arith.constant dense<0xFF800000> : vector<8xf32>
    %6 = vector.multi_reduction <maximumf>, %5, %cst_5 [1] : vector<8x16xf32> to vector<8xf32>
    %7 = vector.shape_cast %6 : vector<8xf32> to vector<8x1xf32>
    %8 = vector.broadcast %7 : vector<8x1xf32> to vector<8x16xf32>
    %9 = arith.subf %5, %8 : vector<8x16xf32>
    %10 = math.exp %9 : vector<8x16xf32>
    %cst_6 = arith.constant dense<0.000000e+00> : vector<8xf32>
    %11 = vector.multi_reduction <add>, %10, %cst_6 [1] : vector<8x16xf32> to vector<8xf32>
    %12 = vector.shape_cast %11 : vector<8xf32> to vector<8x1xf32>
    %13 = math.log %12 : vector<8x1xf32>
    %14 = vector.broadcast %13 : vector<8x1xf32> to vector<8x16xf32>
    %15 = arith.subf %9, %14 : vector<8x16xf32>
    %c0_7 = arith.constant 0 : index
    %c0_8 = arith.constant 0 : index
    %16 = vector.load %arg4[%c0_7, %c0_8] : memref<8x16xf32, #tpu.memory_space<vmem>>, vector<8x16xf32>
    tpu.vector_store %arg4[%c0_7, %c0_8], %15 {strides = array<i32>} : memref<8x16xf32, #tpu.memory_space<vmem>>, vector<8x16xf32>,
    return
  }
  func.func @transform_0(%arg0: i32) -> (i32, i32) {
    %c0_i32 = arith.constant 0 : i32
    %c0_i32_0 = arith.constant 0 : i32
    return %arg0, %c0_i32 : i32, i32
  }
  func.func @transform_1(%arg0: i32) -> (i32, i32) {
    %c0_i32 = arith.constant 0 : i32
    %c0_i32_0 = arith.constant 0 : i32
    %c0_i32_1 = arith.constant 0 : i32
    return %c0_i32, %c0_i32_0 : i32, i32
  }
  func.func @transform_2(%arg0: i32) -> (i32, i32) {
    %c0_i32 = arith.constant 0 : i32
    %c0_i32_0 = arith.constant 0 : i32
    %c0_i32_1 = arith.constant 0 : i32
    return %c0_i32, %c0_i32_0 : i32, i32
  }
  func.func @transform_3(%arg0: i32) -> (i32, i32) {
    %c0_i32 = arith.constant 0 : i32
    %c0_i32_0 = arith.constant 0 : i32
    return %arg0, %c0_i32 : i32, i32
  }
}

</mosaic_0001>

<bundles_post_ra>
// kernel: netlin_forward.1
= control target key start
LH: loop header
LB: loop body
LE: loop exit
PB: predicated region body
PF: predicated region fallthrough
CT: control target
= control target key end

     0   :  { %s932_s0 = inlined_call_operand.vmem [shape: f32[8,784], index: 0, kind: input, shape index: {}]   ;;  %s933_s1 = inlined_call_operand.vmem [shape: f32[784,16], index: 1, kind: input, shape index: {}]   ;;  %s934_s2 = inlined_call_operand.vmem [shape: f32[1,16], index: 2, kind: input, shape index: {}]   ;;  %s935_s3 = inlined_call_operand.hbm [shape: f32[8,16], index: 3, kind: output, shape index: {}]  }
   0x1   :  { %v53_v0 = vld [vmem:[%s933_s1 + $0xf8] sm:$0xff]  ;;  %v52_v2 = vld [vmem:[%s933_s1 + $0xf0] sm:$0xff]  ;;  %v51_v6 = vld [vmem:[%s933_s1 + $0xe8] sm:$0xff] }
   0x2   :  { %v37_v1 = vld [vmem:[%s933_s1 + $0x78] sm:$0xff]  ;;  %440 = vmatprep.subr.mxu0 %v53_v0  ;;  %v36_v4 = vld [vmem:[%s933_s1 + $0x70] sm:$0xff]  ;;  %v35_v8 = vld [vmem:[%s933_s1 + $0x68] sm:$0xff] }
   0x3   :  { %v85_v3 = vld [vmem:[%s933_s1 + $0x1f8] sm:$0xff]  ;;  %441 = vmatpush3.msra.mxu0 %v37_v1  ;;  %v84_v7 = vld [vmem:[%s933_s1 + $0x1f0] sm:$0xff]  ;;  %v83_v10 = vld [vmem:[%s933_s1 + $0x1e8] sm:$0xff] }
   0x4   :  { %v69_v5 = vld [vmem:[%s933_s1 + $0x178] sm:$0xff]  ;;  %475 = vmatprep.subr.mxu1 %v85_v3  ;;  %442 = vmatprep.subr.mxu0 %v52_v2  ;;  %v68_v9 = vld [vmem:[%s933_s1 + $0x170] sm:$0xff]  ;;  %v50_v11 = vld [vmem:[%s933_s1 + $0xe0] sm:$0xff] }
   0x5   :  { %476 = vmatpush3.msra.mxu1 %v69_v5  ;;  %443 = vmatpush3.msra.mxu0 %v36_v4  ;;  %v67_v12 = vld [vmem:[%s933_s1 + $0x168] sm:$0xff]  ;;  %v34_v13 = vld [vmem:[%s933_s1 + $0x60] sm:$0xff]  ;;  %v49_v15 = vld [vmem:[%s933_s1 + $0xd8] sm:$0xff] }
   0x6   :  { %477 = vmatprep.subr.mxu1 %v84_v7  ;;  %444 = vmatprep.subr.mxu0 %v51_v6  ;;  %v82_v14 = vld [vmem:[%s933_s1 + $0x1e0] sm:$0xff]  ;;  %v33_v17 = vld [vmem:[%s933_s1 + $0x58] sm:$0xff]  ;;  %v48_v19 = vld [vmem:[%s933_s1 + $0xd0] sm:$0xff] }
   0x7   :  { %478 = vmatpush3.msra.mxu1 %v68_v9  ;;  %445 = vmatpush3.msra.mxu0 %v35_v8  ;;  %v66_v16 = vld [vmem:[%s933_s1 + $0x160] sm:$0xff]  ;;  %v81_v18 = vld [vmem:[%s933_s1 + $0x1d8] sm:$0xff]  ;;  %v32_v21 = vld [vmem:[%s933_s1 + $0x50] sm:$0xff] }
   0x8   :  { %479 = vmatprep.subr.mxu1 %v83_v10  ;;  %446 = vmatprep.subr.mxu0 %v50_v11  ;;  %v65_v20 = vld [vmem:[%s933_s1 + $0x158] sm:$0xff]  ;;  %v80_v22 = vld [vmem:[%s933_s1 + $0x1d0] sm:$0xff]  ;;  %v47_v23 = vld [vmem:[%s933_s1 + $0xc8] sm:$0xff] }
   0x9   :  { %480 = vmatpush3.msra.mxu1 %v67_v12  ;;  %447 = vmatpush3.msra.mxu0 %v34_v13  ;;  %v64_v24 = vld [vmem:[%s933_s1 + $0x150] sm:$0xff]  ;;  %v31_v25 = vld [vmem:[%s933_s1 + $0x48] sm:$0xff]  ;;  %v46_v27 = vld [vmem:[%s933_s1 + $0xc0] sm:$0xff] }
   0xa   :  { %481 = vmatprep.subr.mxu1 %v82_v14  ;;  %448 = vmatprep.subr.mxu0 %v49_v15  ;;  %v79_v26 = vld [vmem:[%s933_s1 + $0x1c8] sm:$0xff]  ;;  %v30_v29 = vld [vmem:[%s933_s1 + $0x40] sm:$0xff]  ;;  %v45_v31 = vld [vmem:[%s933_s1 + $0xb8] sm:$0xff] }
   0xb   :  { %482 = vmatpush3.msra.mxu1 %v66_v16  ;;  %449 = vmatpush3.msra.mxu0 %v33_v17  ;;  %v63_v28 = vld [vmem:[%s933_s1 + $0x148] sm:$0xff]  ;;  %v78_v30 = vld [vmem:[%s933_s1 + $0x1c0] sm:$0xff]  ;;  %v29_v33 = vld [vmem:[%s933_s1 + $0x38] sm:$0xff] }
   0xc   :  { %483 = vmatprep.subr.mxu1 %v81_v18  ;;  %450 = vmatprep.subr.mxu0 %v48_v19  ;;  %v62_v32 = vld [vmem:[%s933_s1 + $0x140] sm:$0xff]  ;;  %v77_v34 = vld [vmem:[%s933_s1 + $0x1b8] sm:$0xff]  ;;  %v44_v35 = vld [vmem:[%s933_s1 + $0xb0] sm:$0xff] }
   0xd   :  { %484 = vmatpush3.msra.mxu1 %v65_v20  ;;  %451 = vmatpush3.msra.mxu0 %v32_v21  ;;  %v61_v36 = vld [vmem:[%s933_s1 + $0x138] sm:$0xff]  ;;  %v28_v37 = vld [vmem:[%s933_s1 + $0x30] sm:$0xff]  ;;  %v43_v39 = vld [vmem:[%s933_s1 + $0xa8] sm:$0xff] }
   0xe   :  { %485 = vmatprep.subr.mxu1 %v80_v22  ;;  %452 = vmatprep.subr.mxu0 %v47_v23  ;;  %v76_v38 = vld [vmem:[%s933_s1 + $0x1b0] sm:$0xff]  ;;  %v27_v41 = vld [vmem:[%s933_s1 + $0x28] sm:$0xff]  ;;  %v42_v43 = vld [vmem:[%s933_s1 + $0xa0] sm:$0xff] }
   0xf   :  { %486 = vmatpush3.msra.mxu1 %v64_v24  ;;  %453 = vmatpush3.msra.mxu0 %v31_v25  ;;  %v60_v40 = vld [vmem:[%s933_s1 + $0x130] sm:$0xff]  ;;  %v75_v42 = vld [vmem:[%s933_s1 + $0x1a8] sm:$0xff]  ;;  %v26_v45 = vld [vmem:[%s933_s1 + $0x20] sm:$0xff] }
  0x10   :  { %487 = vmatprep.subr.mxu1 %v79_v26  ;;  %454 = vmatprep.subr.mxu0 %v46_v27  ;;  %v59_v44 = vld [vmem:[%s933_s1 + $0x128] sm:$0xff]  ;;  %v74_v46 = vld [vmem:[%s933_s1 + $0x1a0] sm:$0xff]  ;;  %v41_v47 = vld [vmem:[%s933_s1 + $0x98] sm:$0xff] }
  0x11   :  { %488 = vmatpush3.msra.mxu1 %v63_v28  ;;  %455 = vmatpush3.msra.mxu0 %v30_v29  ;;  %v58_v48 = vld [vmem:[%s933_s1 + $0x120] sm:$0xff]  ;;  %v25_v49 = vld [vmem:[%s933_s1 + $0x18] sm:$0xff]  ;;  %v40_v51 = vld [vmem:[%s933_s1 + $0x90] sm:$0xff] }
  0x12   :  { %489 = vmatprep.subr.mxu1 %v78_v30  ;;  %456 = vmatprep.subr.mxu0 %v45_v31  ;;  %v73_v50 = vld [vmem:[%s933_s1 + $0x198] sm:$0xff]  ;;  %v24_v53 = vld [vmem:[%s933_s1 + $0x10] sm:$0xff]  ;;  %v39_v55 = vld [vmem:[%s933_s1 + $0x88] sm:$0xff] }
  0x13   :  { %490 = vmatpush3.msra.mxu1 %v62_v32  ;;  %457 = vmatpush3.msra.mxu0 %v29_v33  ;;  %v57_v52 = vld [vmem:[%s933_s1 + $0x118] sm:$0xff]  ;;  %v72_v54 = vld [vmem:[%s933_s1 + $0x190] sm:$0xff]  ;;  %v23_v57 = vld [vmem:[%s933_s1 + $0x8] sm:$0xff] }
  0x14   :  { %491 = vmatprep.subr.mxu1 %v77_v34  ;;  %458 = vmatprep.subr.mxu0 %v44_v35  ;;  %v56_v56 = vld [vmem:[%s933_s1 + $0x110] sm:$0xff]  ;;  %v71_v58 = vld [vmem:[%s933_s1 + $0x188] sm:$0xff]  ;;  %v38_v59 = vld [vmem:[%s933_s1 + $0x80] sm:$0xff] }
  0x15   :  { %492 = vmatpush3.msra.mxu1 %v61_v36  ;;  %459 = vmatpush3.msra.mxu0 %v28_v37  ;;  %v16_v60 = vld [vmem:[%s932_s0 + $0x8] sm:$0xff]  ;;  %v22_v61 = vld [vmem:[%s933_s1] sm:$0xff]  ;;  %v117_v1 = vld [vmem:[%s933_s1 + $0x2f8] sm:$0xff] }
  0x16   :  { %493 = vmatprep.subr.mxu1 %v76_v38  ;;  %460 = vmatprep.subr.mxu0 %v43_v39  ;;  %v55_v62 = vld [vmem:[%s933_s1 + $0x108] sm:$0xff]  ;;  %v15_v63 = vld [vmem:[%s932_s0] sm:$0xff]  ;;  %v18_v3 = vld [vmem:[%s932_s0 + $0x18] sm:$0xff] }
  0x17   :  { %494 = vmatpush3.msra.mxu1 %v60_v40  ;;  %461 = vmatpush3.msra.mxu0 %v27_v41  ;;  %v70_v0 = vld [vmem:[%s933_s1 + $0x180] sm:$0xff]  ;;  %v101_v4 = vld [vmem:[%s933_s1 + $0x278] sm:$0xff]  ;;  %v17_v5 = vld [vmem:[%s932_s0 + $0x10] sm:$0xff] }
  0x18   :  { %495 = vmatprep.subr.mxu1 %v75_v42  ;;  %462 = vmatprep.subr.mxu0 %v42_v43  ;;  %v54_v2 = vld [vmem:[%s933_s1 + $0x100] sm:$0xff]  ;;  %v116_v6 = vld [vmem:[%s933_s1 + $0x2f0] sm:$0xff]  ;;  %v20_v8 = vld [vmem:[%s932_s0 + $0x28] sm:$0xff] }
  0x19   :  { %496 = vmatpush3.msra.mxu1 %v59_v44  ;;  %463 = vmatpush3.msra.mxu0 %v26_v45  ;;  %v100_v7 = vld [vmem:[%s933_s1 + $0x270] sm:$0xff]  ;;  %v115_v9 = vld [vmem:[%s933_s1 + $0x2e8] sm:$0xff] }
  0x1a   :  { %497 = vmatprep.subr.mxu1 %v74_v46  ;;  %464 = vmatprep.subr.mxu0 %v41_v47 }
  0x1b   :  { %498 = vmatpush3.msra.mxu1 %v58_v48  ;;  %465 = vmatpush3.msra.mxu0 %v25_v49 }
  0x1c   :  { %499 = vmatprep.subr.mxu1 %v73_v50  ;;  %466 = vmatprep.subr.mxu0 %v40_v51 }
  0x1d   :  { %500 = vmatpush3.msra.mxu1 %v57_v52  ;;  %467 = vmatpush3.msra.mxu0 %v24_v53 }
  0x1e   :  { %501 = vmatprep.subr.mxu1 %v72_v54  ;;  %468 = vmatprep.subr.mxu0 %v39_v55 }
  0x1f   :  { %502 = vmatpush3.msra.mxu1 %v56_v56  ;;  %469 = vmatpush3.msra.mxu0 %v23_v57 }
  0x20   :  { %503 = vmatprep.subr.mxu1 %v71_v58  ;;  %470 = vmatprep.subr.mxu0 %v38_v59 }
  0x21   :  { %195 = vmatprep.mubr.f32.mxu0 %v16_v60  ;;  %471 = vmatpush3.msra.mxu0 %v22_v61 }
  0x22   :  { %504 = vmatpush3.msra.mxu1 %v55_v62  ;;  %196 = vmatmul.mubr.f32.vlgmr.msra.gmra.mxu0 %v15_v63 }
  0x23   :  { %505 = vmatprep.subr.mxu1 %v70_v0  ;;  %510 = vmatprep.subr.mxu0 %v117_v1 }
  0x24   :  { %506 = vmatpush3.msra.mxu1 %v54_v2  ;;  %265 = vmatprep.mubr.f32.mxu1 %v18_v3 }
  0x25   :  { %511 = vmatpush3.msra.mxu0 %v101_v4 }
  0x26   :  { %8 = vsyncpa [#allocation3], 0  ;;  %266 = vmatmul.mubr.f32.vlgmr.msra.gmra.mxu1 %v17_v5  ;;  %512 = vmatprep.subr.mxu0 %v116_v6  ;;  %v99_v10 = vld [vmem:[%s933_s1 + $0x268] sm:$0xff]  ;;  %v114_v12 = vld [vmem:[%s933_s1 + $0x2e0] sm:$0xff]  ;;  %v584_v14 = vmov 0.0   ;;  %vm127_vm0 = vcmask 130048  }
  0x27   :  { %v119_v11 = vld [vmem:[%s933_s1 + $0x308] sm:$0xff]  ;;  %513 = vmatpush3.msra.mxu0 %v100_v7  ;;  %335 = vmatprep.mubr.f32.mxu0 %v20_v8  ;;  %v98_v13 = vld [vmem:[%s933_s1 + $0x260] sm:$0xff]  ;;  %v113_v16 = vld [vmem:[%s933_s1 + $0x2d8] sm:$0xff]  ;;  %vm585_vm1 = vmmov 0  }
  0x28   :  { %514 = vmatprep.subr.mxu0 %v115_v9  ;;  %548 = vmatprep.subr.mxu1 %v584_v14  ;;  %v118_v15 = vld [vmem:[%s933_s1 + $0x300] sm:$0xff]  ;;  %v97_v17 = vld [vmem:[%s933_s1 + $0x258] sm:$0xff]  ;;  %v21_v18 = vld [vmem:[%s932_s0 + $0x30] sm:$0xff] }
  0x29   :  { %515 = vmatpush3.msra.mxu0 %v99_v10  ;;  %549 = vmatpush3.msra.mxu1 %v119_v11  ;;  %v112_v19 = vld [vmem:[%s933_s1 + $0x2d0] sm:$0xff]  ;;  %v111_v21 = vld [vmem:[%s933_s1 + $0x2c8] sm:$0xff]  ;;  %v110_v23 = vld [vmem:[%s933_s1 + $0x2c0] sm:$0xff] }
  0x2a   :  { %516 = vmatprep.subr.mxu0 %v114_v12  ;;  %550 = vmatprep.subr.mxu1 %v584_v14  ;;  %v96_v20 = vld [vmem:[%s933_s1 + $0x250] sm:$0xff]  ;;  %v95_v22 = vld [vmem:[%s933_s1 + $0x248] sm:$0xff]  ;;  %v94_v24 = vld [vmem:[%s933_s1 + $0x240] sm:$0xff] }
  0x2b   :  { %517 = vmatpush3.msra.mxu0 %v98_v13  ;;  %551 = vmatpush3.msra.mxu1 %v118_v15  ;;  %v109_v25 = vld [vmem:[%s933_s1 + $0x2b8] sm:$0xff]  ;;  %v108_v27 = vld [vmem:[%s933_s1 + $0x2b0] sm:$0xff]  ;;  %v107_v29 = vld [vmem:[%s933_s1 + $0x2a8] sm:$0xff] }
  0x2c   :  { %518 = vmatprep.subr.mxu0 %v113_v16  ;;  %552 = vmatprep.mubr.msk.f32.mxu1 %vm585_vm1, %v584_v14  ;;  %v93_v26 = vld [vmem:[%s933_s1 + $0x238] sm:$0xff]  ;;  %v92_v28 = vld [vmem:[%s933_s1 + $0x230] sm:$0xff]  ;;  %v91_v30 = vld [vmem:[%s933_s1 + $0x228] sm:$0xff] }
  0x2d   :  { %519 = vmatpush3.msra.mxu0 %v97_v17  ;;  %553 = vmatmul.mubr.msk.f32.vlgmr.msra.gmra.mxu1 %vm127_vm0, %v21_v18  ;;  %v106_v31 = vld [vmem:[%s933_s1 + $0x2a0] sm:$0xff]  ;;  %v105_v33 = vld [vmem:[%s933_s1 + $0x298] sm:$0xff]  ;;  %v104_v35 = vld [vmem:[%s933_s1 + $0x290] sm:$0xff] }
  0x2e   :  { %520 = vmatprep.subr.mxu0 %v112_v19  ;;  %v90_v32 = vld [vmem:[%s933_s1 + $0x220] sm:$0xff]  ;;  %v89_v34 = vld [vmem:[%s933_s1 + $0x218] sm:$0xff]  ;;  %v88_v36 = vld [vmem:[%s933_s1 + $0x210] sm:$0xff] }
  0x2f   :  { %521 = vmatpush3.msra.mxu0 %v96_v20  ;;  %v103_v37 = vld [vmem:[%s933_s1 + $0x288] sm:$0xff]  ;;  %v102_v39 = vld [vmem:[%s933_s1 + $0x280] sm:$0xff] }
  0x30   :  { %522 = vmatprep.subr.mxu0 %v111_v21  ;;  %v87_v38 = vld [vmem:[%s933_s1 + $0x208] sm:$0xff]  ;;  %v86_v40 = vld [vmem:[%s933_s1 + $0x200] sm:$0xff] }
  0x31   :  { %523 = vmatpush3.msra.mxu0 %v95_v22  ;;  %v19_v41 = vld [vmem:[%s932_s0 + $0x20] sm:$0xff]  ;;  %s586_s0 = smov [#allocation2]  }
  0x32   :  { %524 = vmatprep.subr.mxu0 %v110_v23  ;;  %v438_v49 = vld [vmem:[%s934_s2] ss:$0 sm:$0xff]  ;;  %s430_s1 = sshll.u32 %s586_s0, 4  ;;  %s431_s1 = int_to_ptr.vmem [resolvable:$true] %s430_s1 }
  0x33   :  { %525 = vmatpush3.msra.mxu0 %v94_v24  ;;  %s562_s2 = scalar_lea.vmem %s431_s1, 128  ;;  %p567_p1 = scmp.lt.s32.totalorder %s431_s1, %s431_s1 }
  0x34   :  { %526 = vmatprep.subr.mxu0 %v109_v25  ;;  %p563_p0 = scmp.ne.s32.totalorder %s431_s1, %s562_s2  ;;  %p568_p2 = scmp.lt.s32.totalorder %s562_s2, %s562_s2 }
  0x35   :  { %527 = vmatpush3.msra.mxu0 %v93_v26 }
  0x36   :  { %528 = vmatprep.subr.mxu0 %v108_v27  ;;  %p569_p3 = por %p568_p2, %p567_p1 }
  0x37   :  { %529 = vmatpush3.msra.mxu0 %v92_v28 }
  0x38   :  { %530 = vmatprep.subr.mxu0 %v107_v29  ;;  %p570_p4 = pnand %p569_p3, %p563_p0 }
  0x39   :  { %531 = vmatpush3.msra.mxu0 %v91_v30 }
  0x3a   :  { %532 = vmatprep.subr.mxu0 %v106_v31 }
  0x3b   :  { %533 = vmatpush3.msra.mxu0 %v90_v32 }
  0x3c   :  { %534 = vmatprep.subr.mxu0 %v105_v33 }
  0x3d   :  { %535 = vmatpush3.msra.mxu0 %v89_v34 }
  0x3e   :  { %536 = vmatprep.subr.mxu0 %v104_v35 }
  0x3f   :  { %537 = vmatpush3.msra.mxu0 %v88_v36 }
  0x40   :  { %538 = vmatprep.subr.mxu0 %v103_v37 }
  0x41   :  { %539 = vmatpush3.msra.mxu0 %v87_v38 }
  0x42   :  { %540 = vmatprep.subr.mxu0 %v102_v39 }
  0x43   :  { %541 = vmatpush3.msra.mxu0 %v86_v40 }
  0x44   :  { %336 = vmatmul.mubr.f32.vlgmr.msra.gmra.mxu0 %v19_v41 }
  0xe2   :  { %v472_v46 = vpop.f32.mrf.mxu0 }
  0xe4   :  { %v473_v47 = vpop.f32.mrf.mxu0 }
  0xe5   :  { %v474_v48 = vadd.f32 %v473_v47, %v472_v46 }
  0xe6   :  { %v507_v42 = vpop.f32.mrf.mxu1 }
  0xe7   :  { %v198_v50 = vadd.f32 %v474_v48, %v438_v49 }
  0xe8   :  { %v508_v43 = vpop.f32.mrf.mxu1 }
  0xe9   :  { %v509_v51 = vadd.f32 %v508_v43, %v507_v42 }
  0xeb   :  { %v268_v54 = vadd.f32 %v509_v51, %v198_v50 }
  0xed   :  { %v407_v44 = vpop.f32.mrf.mxu1 }
  0xef   :  { %v554_v45 = vpop.f32.mrf.mxu1 }
 0x104   :  { %v542_v52 = vpop.f32.mrf.mxu0 }
 0x106   :  { %v543_v53 = vpop.f32.mrf.mxu0 }
 0x107   :  { %v544_v55 = vadd.f32 %v543_v53, %v542_v52 }
 0x109   :  { %v338_v56 = vadd.f32 %v544_v55, %v268_v54 }
 0x10b   :  { %v408_v57 = vadd.f32 %v407_v44, %v338_v56 }
 0x10d   :  { %v411_v58 = vsel %vm127_vm0, %v408_v57, -inf }
 0x10e   :  { %412 = vmax.xlane.f32.xlu0 %v411_v58 }
 0x197   :  { %v413_v59 = vpop.xlane.xlu0 %412 }
 0x198   :  { %v414_v60 = vsub.f32 %v408_v57, %v413_v59 }
 0x19a   :  { %v415_v61 = vmul.f32 1.442695, %v414_v60 }
 0x19c   :  { %558 = vpow2.f32 %v415_v61 }
 0x1a9   :  { %v559_v62 = vpop.eup %558 }
 0x1aa   :  { %v417_v63 = vsel %vm127_vm0, %v559_v62, 0.0 }
 0x1ab   :  { %418 = vadd.xlane.f32.xlu0 %v417_v63 }
 0x234   :  { %v419_v0 = vpop.xlane.xlu0 %418 }
 0x235   :  { %560 = vlog2.f32 %v419_v0 }
 0x242   :  { %v561_v1 = vpop.eup %560 }
 0x243   :  { %v421_v2 = vmul.f32 0.6931472, %v561_v1 }
 0x245   :  { %v422_v3 = vsub.f32 %v414_v60, %v421_v2 }
 0x247   :  { %423 = vst.msk [vmem:[#allocation2] sm:$0xff] %vm127_vm0, %v422_v3 }
 0x248   :  { %573 = shalt.err (!%p570_p4)
}
 0x249   :  { %433 = dma.vmem_to_hbm [thread:$0]  %s431_s1, 128, %s935_s3, [#allocation3]  }
 0x24a   :  { %582 = dma.done.wait [#allocation3], 128  }
 0x24b   :  { %583 = vsyncadd [#allocation3], 4294967168 }
 0x24c   :  { %437 = vsyncpa [#allocation3], 1 }

</bundles_post_ra>
